<compile_context>
chip_gen: v7x
topology: tpu7x:2x2x1
jax: 0.10.0
libtpu: 0.0.40
codegen_flags: <defaults>
</compile_context>

<pallas_src>
import jax
import jax.numpy as jnp
from jax import lax
from jax.experimental import pallas as pl
from jax.experimental.pallas import tpu as pltpu


# -----------------------------------------------------------------------------
# Tiling helpers
# -----------------------------------------------------------------------------

def _round_up(x, m):
    return ((x + m - 1) // m) * m


def _pick_tile_rows(n_total, cap_rows):
    """Rows per block along the tiled ("parallel") axis.

    - tiny extents: single full block (splitting would need <8-row blocks),
    - otherwise: a multiple of 8, capped at cap_rows, and <= ceil(n/2) rounded
      up so the grid has >= 2 steps (keeps both v7x TensorCores busy).
    cap_rows must be a multiple of 8.
    """
    if n_total <= 16:
        return n_total
    half = _round_up(-(-n_total // 2), 8)
    return max(8, min(cap_rows, half))


# -----------------------------------------------------------------------------
# Kernels
# -----------------------------------------------------------------------------

def _pe_lane_dense_kernel(consts_ref, o_ref, pe_ref):
    """Write one (tr, 128) tile of the flattened (seq_len*d_model,) encoding.

    consts_ref: (2, 128) f32 -- row 0 = slope (per lane), row 1 = intercept.
    Grid = (row_tiles [parallel], batch [arbitrary]).  angle = row*slope +
    (intercept + tile_offset*slope); the sin is evaluated only for batch == 0
    (into VMEM scratch) and re-stored for batch > 0.
    """
    t = pl.program_id(0)
    b = pl.program_id(1)

    @pl.when(b == 0)
    def _():
        tr = pe_ref.shape[0]
        slope = consts_ref[0:1, :]                                    # (1, 128)
        base = consts_ref[1:2, :] + (t * tr).astype(jnp.float32) * slope
        rowf = lax.broadcasted_iota(jnp.int32, (tr, 128), 0).astype(jnp.float32)
        pe_ref[...] = jnp.sin(rowf * slope + base)

    o_ref[...] = pe_ref[...].astype(o_ref.dtype)


def _pe_kernel(consts_ref, o_ref, pe_ref):
    """Write one (ts, d_model) tile of the (seq_len, d_model) encoding.

    consts_ref: (2, d_model) f32 -- row 0 = div_term, row 1 = phase.
    Grid = (seq_tiles [parallel], batch [arbitrary]).
    """
    i = pl.program_id(0)
    b = pl.program_id(1)

    @pl.when(b == 0)
    def _():
        ts, d = pe_ref.shape
        div = consts_ref[0:1, :]                                      # (1, d)
        base = consts_ref[1:2, :] + (i * ts).astype(jnp.float32) * div
        posf = lax.broadcasted_iota(jnp.int32, (ts, d), 0).astype(jnp.float32)
        pe_ref[...] = jnp.sin(posf * div + base)

    o_ref[...] = pe_ref[...].astype(o_ref.dtype)


# -----------------------------------------------------------------------------
# Wrapper
# -----------------------------------------------------------------------------

def positional_encoding(x, d_model):
    """Pallas equivalent of PositionalEncoding(d_model).forward(x).

    x: (B, seq_len, embed_size) -- only the shape is used.
    returns: (B, seq_len, d_model) float32.
    """
    if d_model % 2 != 0:
        raise ValueError("d_model must be even (PyTorch slicing assumes this).")
    B, seq_len = int(x.shape[0]), int(x.shape[1])

    # Per-column constants computed once in the wrapper: the kernel runs no exp
    # and exactly one sin per element (cos(x) = sin(x + pi/2)).
    half = jnp.arange(d_model // 2, dtype=jnp.float32)
    div_half = 1.0 / jnp.power(jnp.float32(10000.0),
                               2.0 * (half / jnp.float32(d_model)))
    col_div = jnp.repeat(div_half, 2)                                  # (d_model,)
    col = jnp.arange(d_model)
    col_phase = jnp.where(col % 2 == 0, 0.0, jnp.pi / 2.0).astype(jnp.float32)

    compiler_params = pltpu.CompilerParams(
        dimension_semantics=("parallel", "arbitrary"),
        vmem_limit_bytes=32 * 1024 * 1024,
    )

    use_lane_dense = (
        d_model <= 128 and 128 % d_model == 0 and (seq_len * d_model) % 128 == 0
    )

    if use_lane_dense:
        # Flatten (seq_len, d_model) -> (n_rows, 128): unmasked 128-lane stores.
        pos_per_row = 128 // d_model
        n_rows = (seq_len * d_model) // 128
        tr = _pick_tile_rows(n_rows, 8192)        # 8192*128*4B = 4 MiB / block

        lane = jnp.arange(128)
        lane_div = col_div[lane % d_model]
        lane_phase = col_phase[lane % d_model]
        slope = jnp.float32(pos_per_row) * lane_div
        intercept = (lane // d_model).astype(jnp.float32) * lane_div + lane_phase
        consts = jnp.stack([slope, intercept]).astype(jnp.float32)    # (2, 128)

        out = pl.pallas_call(
            _pe_lane_dense_kernel,
            out_shape=jax.ShapeDtypeStruct((B, n_rows, 128), jnp.float32),
            grid_spec=pltpu.PrefetchScalarGridSpec(
                num_scalar_prefetch=0,
                grid=(pl.cdiv(n_rows, tr), B),
                in_specs=[pl.BlockSpec((2, 128), lambda t, b: (0, 0))],
                out_specs=pl.BlockSpec((None, tr, 128), lambda t, b: (b, t, 0)),
                scratch_shapes=[pltpu.VMEM((tr, 128), jnp.float32)],
            ),
            compiler_params=compiler_params,
        )(consts)
        return out.reshape(B, seq_len, d_model)   # free reshape (row-major)

    # General (ts, d_model) layout.
    # TODO(synk): for d_model < 128 that does not flatten exactly into 128-lane
    # rows, stores are masked (vst.msk); padding + a wrapper slice would add a
    # full extra read+write pass, so the masked-store layout is kept.
    cap_rows = max(8, ((4 * 1024 * 1024) // (d_model * 4)) // 8 * 8)  # ~4 MiB/block
    ts = _pick_tile_rows(seq_len, cap_rows)
    consts = jnp.stack([col_div, col_phase]).astype(jnp.float32)      # (2, d_model)

    out = pl.pallas_call(
        _pe_kernel,
        out_shape=jax.ShapeDtypeStruct((B, seq_len, d_model), jnp.float32),
        grid_spec=pltpu.PrefetchScalarGridSpec(
            num_scalar_prefetch=0,
            grid=(pl.cdiv(seq_len, ts), B),
            in_specs=[pl.BlockSpec((2, d_model), lambda i, b: (0, 0))],
            out_specs=pl.BlockSpec((None, ts, d_model), lambda i, b: (b, i, 0)),
            scratch_shapes=[pltpu.VMEM((ts, d_model), jnp.float32)],
        ),
        compiler_params=compiler_params,
    )(consts)
    return out


# -----------------------------------------------------------------------------
# Pure-JAX reference (mirrors the PyTorch code)
# -----------------------------------------------------------------------------

def _reference(x, d_model):
    B, seq_len = x.shape[0], x.shape[1]
    position = jnp.arange(seq_len, dtype=jnp.float32)[:, None]
    div_term = 1.0 / jnp.power(
        10000.0, 2.0 * (jnp.arange(d_model // 2, dtype=jnp.float32) / d_model)
    )
    pos_enc = jnp.zeros((seq_len, d_model), jnp.float32)
    pos_enc = pos_enc.at[:, 0::2].set(jnp.sin(position * div_term))
    pos_enc = pos_enc.at[:, 1::2].set(jnp.cos(position * div_term))
    return jnp.tile(pos_enc, (B, 1, 1))


if __name__ == "__main__":
    key = jax.random.PRNGKey(0)

    # 1) Lane-dense flattened-store path (d_model = 32 divides 128; exact flatten).
    B, seq_len, embed_size, d_model = 2, 8, 32, 32
    x = jax.random.normal(key, (B, seq_len, embed_size), dtype=jnp.float32)
    out = jax.block_until_ready(positional_encoding(x, d_model))
    ref = _reference(x, d_model)
    assert out.shape == (B, seq_len, d_model)
    assert jnp.allclose(out, ref, atol=1e-5, rtol=1e-5)

    # 2) General path: d_model > 128 (and not dividing 128), small seq (single tile).
    B2, seq2, d2 = 3, 10, 256
    x2 = jax.random.normal(jax.random.PRNGKey(1), (B2, seq2, 8), dtype=jnp.float32)
    out2 = jax.block_until_ready(positional_encoding(x2, d2))
    ref2 = _reference(x2, d2)
    assert out2.shape == (B2, seq2, d2)
    assert jnp.allclose(out2, ref2, atol=1e-5, rtol=1e-5)

    # 3) General path fallback: d_model < 128 but seq*d_model not a multiple of
    #    128; seq > 16 -> two sequence tiles with a partial last tile.
    B3, seq3, d3 = 2, 35, 64
    x3 = jax.random.normal(jax.random.PRNGKey(2), (B3, seq3, 16), dtype=jnp.float32)
    out3 = jax.block_until_ready(positional_encoding(x3, d3))
    ref3 = _reference(x3, d3)
    assert out3.shape == (B3, seq3, d3)
    assert jnp.allclose(out3, ref3, atol=1e-5, rtol=1e-5)

    print("KERNEL_OK")
</pallas_src>

<mosaic_0001>
module attributes {stable_mosaic.version = 11 : i64} {
  func.func @_pe_lane_dense_kernel(%arg0: i32, %arg1: i32, %arg2: memref<2x128xf32, #tpu.memory_space<vmem>>, %arg3: memref<1x2x128xf32, #tpu.memory_space<vmem>>, %arg4: memref<2x128xf32, #tpu.memory_space<vmem>>) attributes {dimension_semantics = [#tpu.dimension_semantics<parallel>, #tpu.dimension_semantics<arbitrary>], iteration_bounds = array<i64: 1, 2>, scalar_prefetch = 0 : i64, scratch_operands = 1 : i64, tpu.core_type = #tpu.core_type<tc>, window_params = [{pipeline_mode = #tpu.pipeline_mode<synchronous>, transform_indices = @transform_0, window_bounds = array<i64: 2, 128>}, {transform_indices = @transform_1, window_bounds = array<i64: 1, 2, 128>}]} {
    %c0_i32 = arith.constant 0 : i32
    %0 = arith.cmpi eq, %arg1, %c0_i32 : i32
    %1 = arith.extui %0 : i1 to i32
    %c0_i32_0 = arith.constant 0 : i32
    %2 = arith.cmpi ne, %1, %c0_i32_0 : i32
    scf.if %2 {
      %c0_5 = arith.constant 0 : index
      %c0_6 = arith.constant 0 : index
      %7 = vector.load %arg2[%c0_5, %c0_6] : memref<2x128xf32, #tpu.memory_space<vmem>>, vector<1x128xf32>
      %c1 = arith.constant 1 : index
      %c0_7 = arith.constant 0 : index
      %8 = vector.load %arg2[%c1, %c0_7] : memref<2x128xf32, #tpu.memory_space<vmem>>, vector<1x128xf32>
      %c2_i32 = arith.constant 2 : i32
      %9 = arith.muli %arg0, %c2_i32 : i32
      %10 = arith.sitofp %9 : i32 to f32
      %11 = vector.broadcast %10 : f32 to vector<1x128xf32>
      %12 = arith.mulf %11, %7 : vector<1x128xf32>
      %13 = arith.addf %8, %12 : vector<1x128xf32>
      %14 = tpu.iota {dimensions = array<i32: 0>} : vector<2x128xi32>
      %15 = arith.sitofp %14 : vector<2x128xi32> to vector<2x128xf32>
      %16 = vector.broadcast %7 : vector<1x128xf32> to vector<2x128xf32>
      %17 = arith.mulf %15, %16 : vector<2x128xf32>
      %18 = vector.broadcast %13 : vector<1x128xf32> to vector<2x128xf32>
      %19 = arith.addf %17, %18 : vector<2x128xf32>
      %20 = math.sin %19 : vector<2x128xf32>
      %c0_8 = arith.constant 0 : index
      %c0_9 = arith.constant 0 : index
      %21 = vector.load %arg4[%c0_8, %c0_9] : memref<2x128xf32, #tpu.memory_space<vmem>>, vector<2x128xf32>
      tpu.vector_store %arg4[%c0_8, %c0_9], %20 {strides = array<i32>} : memref<2x128xf32, #tpu.memory_space<vmem>>, vector<2x128xf32>,
    } else {
    }
    %c0 = arith.constant 0 : index
    %c0_1 = arith.constant 0 : index
    %3 = vector.load %arg4[%c0, %c0_1] : memref<2x128xf32, #tpu.memory_space<vmem>>, vector<2x128xf32>
    %c0_2 = arith.constant 0 : index
    %c0_3 = arith.constant 0 : index
    %c0_4 = arith.constant 0 : index
    %4 = vector.load %arg3[%c0_2, %c0_3, %c0_4] : memref<1x2x128xf32, #tpu.memory_space<vmem>>, vector<1x2x128xf32>
    %5 = vector.shape_cast %4 : vector<1x2x128xf32> to vector<2x128xf32>
    %6 = vector.shape_cast %3 : vector<2x128xf32> to vector<1x2x128xf32>
    tpu.vector_store %arg3[%c0_2, %c0_3, %c0_4], %6 {strides = array<i32>} : memref<1x2x128xf32, #tpu.memory_space<vmem>>, vector<1x2x128xf32>,
    return
  }
  func.func @transform_0(%arg0: i32, %arg1: i32) -> (i32, i32) {
    %c0_i32 = arith.constant 0 : i32
    %c0_i32_0 = arith.constant 0 : i32
    %c0_i32_1 = arith.constant 0 : i32
    return %c0_i32, %c0_i32_0 : i32, i32
  }
  func.func @transform_1(%arg0: i32, %arg1: i32) -> (i32, i32, i32) {
    %c0_i32 = arith.constant 0 : i32
    %c0_i32_0 = arith.constant 0 : i32
    return %arg1, %arg0, %c0_i32 : i32, i32, i32
  }
}

</mosaic_0001>

<bundles_post_ra>
// kernel: tpu_custom_call.1
= control target key start
LH: loop header
LB: loop body
LE: loop exit
PB: predicated region body
PF: predicated region fallthrough
CT: control target
= control target key end

     0   :  { %6 = vsyncpa [#allocation4], 0  ;;  %s734_s0 = inlined_call_operand.hbm [shape: f32[2,128], index: 0, kind: input, shape index: {}]   ;;  %s735_s1 = inlined_call_operand.hbm [shape: f32[2,2,128], index: 1, kind: output, shape index: {}]  }
   0x1   :  { %7 = vsyncpa [#allocation5], 0 }
   0x2   :  { %9 = vsyncpa [#allocation5 + $0x1], 0  ;;  %s562_s6 = smov 0   ;;  %s564_s7 = smov 0  }
   0x3   :  { %s566_s8 = smov 0   ;;  %s568_s9 = smov 0  }
   0x4   :  { %s570_s10 = smov 0   ;;  %s572_s11 = smov 0  }
   0x5 LB: > { %s336_s12 = sadd.s32 4294967295, %s542_s11   ;;  %s337_s13 = sadd.s32 4294967294, %s542_s11   ;;  %s542_s11 = sphi %s572_s11, %s15_s11   ;;  %s538_s10 = sphi %s570_s10, %s753_s10   ;;  %s534_s9 = sphi %s568_s9, %s752_s9   ;;  %s530_s8 = sphi %s566_s8, %s751_s8   ;;  %s526_s7 = sphi %s564_s7, %s750_s7   ;;  %s522_s6 = sphi %s562_s6, %s749_s6  }
   0x6   : > { %s24_s14 = sadd.s32 1, %s538_s10  ;;  %s57_s15 = sadd.s32 1, %s530_s8 }
   0x7   : > { %p25_p0 = scmp.ge.s32.totalorder %s24_s14, 2  ;;  %p67_p1 = scmp.ne.s32.totalorder %s530_s8, %s526_s7 }
   0x8   : > { %p68_p2 = scmp.eq.s32.totalorder %s336_s12, 1  ;;  %p73_p3 = scmp.ne.s32.totalorder %s526_s7, %s522_s6 }
   0x9   : > { %s755_s14 = smov (%p25_p0, %s24_s14), 0  ;;  %p74_p5 = scmp.eq.s32.totalorder %s337_s13, 1 }
   0xa   : > { %p602_p4 = por %p68_p2, %p67_p1  ;;  %s52_s17 = ssub.s32 %s538_s10, %s755_s14 }
   0xb   : > { %p338_p6 = scmp.ge.s32.totalorder %s542_s11, 1  ;;  %p55_p7 = scmp.eq.s32.totalorder %s52_s17, 0 }
   0xc   : > { %s740_s16 = scalar_select %p602_p4, 1, 0 }
   0xd   : > { %p609_p8 = por %p74_p5, %p73_p3  ;;  %p81_p9 = scmp.lt.s32.totalorder %s542_s11, 3 }
   0xe   : > { %s615_s19 = scalar_select %p55_p7, %s530_s8, %s57_s15  }
   0xf   : > { %s741_s18 = scalar_select %p609_p8, 1, 0 }
  0x10   : > { %p617_p10 = pnand %p338_p6, %p81_p9  ;;  %p621_p11 = scmp.eq.s32.totalorder %s336_s12, 0 }
  0x11   : > { %s544_s22 = smov [#allocation3]   ;;  %s432_s27 = scalar_lea.hbm %s734_s0, 32 }
  0x12   : > { %s742_s20 = scalar_select %p617_p10, 1, 0 }
  0x13   : > { %s743_s21 = scalar_select %p621_p11, 1, 0 }
  0x14   : > { %p362_p12 = pneg %p617_p10  ;;  %s94_s23 = sshll.u32 %s544_s22, 4  ;;  %s95_s23 = int_to_ptr.vmem [resolvable:$true] %s94_s23 }
  0x15   : > { %p433_p0 = scmp.ne.s32.totalorder %s734_s0, %s432_s27  ;;  %p439_p5 = scmp.lt.u32.totalorder %s432_s27, %s734_s0 }
  0x16   : > { %p629_p13 = pnand %p621_p11, %p362_p12 }
  0x18   : > { %p434_p1 = pneg %p629_p13 }
  0x1a   : > { %p435_p2 = pnand %p434_p1, %p433_p0 }
  0x1c   : > { %p436_p3 = pneg %p435_p2 }
  0x1e   : > { %p441_p6 = pnand %p439_p5, %p436_p3 }
  0x20   : > { %444 = shalt.err (!%p441_p6)
}
  0x21   : > { %s445_s3 = scalar_lea.vmem %s95_s23, 32  ;;  %p453_p8 = scmp.lt.s32.totalorder %s95_s23, %s95_s23 }
  0x22   : > { %p446_p7 = scmp.ne.s32.totalorder %s95_s23, %s445_s3  ;;  %p454_p4 = scmp.lt.s32.totalorder %s445_s3, %s445_s3 }
  0x24   : > { %p448_p9 = pnand %p446_p7, %p434_p1  ;;  %p455_p11 = por %p454_p4, %p453_p8 }
  0x26   : > { %p449_p12 = pneg %p448_p9 }
  0x28   : > { %p456_p10 = pnand %p455_p11, %p449_p12 }
  0x2a   : > { %459 = shalt.err (!%p456_p10)
}
  0x2b   : > { %365 = dma.hbm_to_vmem [thread:$0]  (!%p629_p13), %s734_s0, 32, %s95_s23, [#allocation4]  }
  0x2c   : > { %p745_p0 = scmp.ne.s32.totalorder %s742_s20, 0 }
  0x2d   : > { %p746_p2 = scmp.ne.s32.totalorder (!%p745_p0), %s743_s21, 0 }
  0x2e   : > { %107 = sbr.rel (%p745_p0) target bundleno = 173 (0xad), region = 24 }
  0x35   : > { %513 = dma.done.wait (%p746_p2), [#allocation4], 32  }
  0x36   : > { %515 = vsyncadd (%p746_p2), [#allocation4], 4294967264  ;;  %s119_s12 = sand.u32 1, %s526_s7   ;;  %p343_p4 = scmp.ne.s32.totalorder %s534_s9, 0 }
  0x37   : > { %s658_s13 = sshll.u32 %s119_s12, 1  ;;  %v126_v0 = vld [vmem:[#allocation3] sm:$0x1] (!%p343_p4)  ;;  %v127_v1 = vld [vmem:[#allocation3 + $0x1] sm:$0x1] (!%p343_p4)  ;;  %v133_v2 = vlaneseq (!%p343_p4) }
  0x38   : > { %s121_s15 = scalar_lea.vmem [#allocation6], %s658_s13  ;;  %125 = sbr.rel (%p343_p4) target bundleno = 148 (0x94), region = 32  ;;  %v131_v3 = vmul.f32 (!%p343_p4), 0.0, %v126_v0  ;;  %v545_v23 = vmov (!%p343_p4), 683565275  }
  0x39   : > { %v134_v4 = vshrl.u32 (!%p343_p4), %v133_v2, 7  ;;  %v546_v25 = vmov (!%p343_p4), 2475754826   ;;  %v547_v27 = vmov (!%p343_p4), 2131351028  }
  0x3a   : > { %v132_v5 = vadd.f32 (!%p343_p4), %v131_v3, %v127_v1  ;;  %v548_v29 = vmov (!%p343_p4), 2102212464   ;;  %v549_v31 = vmov (!%p343_p4), 920167782   ;;  %v550_v38 = vmov (!%p343_p4), 1326507024  }
  0x3b   : > { %v135_v6 = vcvt.s32.f32 (!%p343_p4), %v134_v4  ;;  %v138_v7 = vsub.s32 (!%p343_p4), 0, %v134_v4 }
  0x3d   : > { %v139_v8 = vrot.slane (!%p343_p4), %v126_v0, %v138_v7  ;;  %v144_v9 = vrot.slane (!%p343_p4), %v132_v5, %v138_v7 }
  0x3f   : > { %v140_v10 = vmul.f32 %v139_v8, %v135_v6 }
  0x41   : > { %v662_v11 = vadd.f32 %v144_v9, %v140_v10 }
  0x43   : > { %v149_v12 = vand.u32 2139095040, %v662_v11  ;;  %v146_v14 = vand.u32 2147483647, %v662_v11  ;;  %vm148_vm7 = vcmp.lt.s32.totalorder %v662_v11, 0  ;;  %vm238_vm12 = vweird.f32 %v662_v11 }
  0x45   : > { %v150_v13 = vshrl.u32 %v149_v12, 23  ;;  %v153_v17 = vand.u32 8388607, %v146_v14  ;;  %vm147_vm8 = vcmp.le.f32.partialorder %v146_v14, 0.7853982 }
  0x47   : > { %v344_v15 = vadd.s32 4294967169, %v150_v13  ;;  %v154_v20 = vor.u32 8388608, %v153_v17 }
  0x49   : > { %v156_v16 = vadd.s32 1, %v344_v15  ;;  %v194_v40 = vshll.u32 %v154_v20, 8 }
  0x4b   : > { %vm157_vm0 = vcmp.gt.s32.totalorder %v156_v16, 0 }
  0x4c   : > { %v158_v18 = vsel %vm157_vm0, %v156_v16, 0 }
  0x4d   : > { %v160_v19 = vand.u32 31, %v158_v18  ;;  %v159_v21 = vshrl.u32 %v158_v18, 5 }
  0x4f   : > { %v161_v22 = vsub.s32 32, %v160_v19  ;;  %v163_v24 = vshll.u32 %v545_v23, %v160_v19  ;;  %v166_v26 = vshll.u32 %v546_v25, %v160_v19  ;;  %v169_v28 = vshll.u32 %v547_v27, %v160_v19 }
  0x50   : > { %v172_v30 = vshll.u32 %v548_v29, %v160_v19  ;;  %v175_v32 = vshll.u32 %v549_v31, %v160_v19  ;;  %vm178_vm1 = vcmp.lt.s32.totalorder %v159_v21, 1  ;;  %vm181_vm2 = vcmp.lt.s32.totalorder %v159_v21, 4 }
  0x51   : > { %v162_v33 = vshrl.u32 %v545_v23, %v161_v22  ;;  %v164_v34 = vshrl.u32 %v546_v25, %v161_v22  ;;  %v167_v35 = vshrl.u32 %v547_v27, %v161_v22  ;;  %v170_v36 = vshrl.u32 %v548_v29, %v161_v22 }
  0x52   : > { %v173_v37 = vshrl.u32 %v549_v31, %v161_v22  ;;  %v176_v39 = vshrl.u32 %v550_v38, %v161_v22  ;;  %vm179_vm3 = vcmp.lt.s32.totalorder %v159_v21, 2  ;;  %vm180_vm4 = vcmp.lt.s32.totalorder %v159_v21, 3 }
  0x53   : > { %v165_v41 = vor.u32 %v164_v34, %v163_v24  ;;  %v168_v42 = vor.u32 %v167_v35, %v166_v26  ;;  %v171_v43 = vor.u32 %v170_v36, %v169_v28 }
  0x54   : > { %v174_v44 = vor.u32 %v173_v37, %v172_v30  ;;  %v177_v45 = vor.u32 %v176_v39, %v175_v32 }
  0x55   : > { %v182_v46 = vsel %vm178_vm1, %v162_v33, %v165_v41  ;;  %v183_v47 = vsel %vm181_vm2, %v171_v43, 2102212464  ;;  %v186_v48 = vsel %vm178_vm1, %v165_v41, %v168_v42  ;;  %v190_v49 = vsel %vm178_vm1, %v168_v42, %v171_v43 }
  0x56   : > { %v184_v50 = vsel %vm180_vm4, %v168_v42, %v183_v47  ;;  %v187_v51 = vsel %vm181_vm2, %v174_v44, 920167782  ;;  %v191_v52 = vsel %vm181_vm2, %v177_v45, 1326507024 }
  0x57   : > { %v188_v53 = vsel %vm180_vm4, %v171_v43, %v187_v51  ;;  %v192_v54 = vsel %vm180_vm4, %v174_v44, %v191_v52  ;;  %v185_v55 = vsel %vm179_vm3, %v182_v46, %v184_v50 }
  0x58   : > { %v189_v56 = vsel %vm179_vm3, %v186_v48, %v188_v53  ;;  %v193_v57 = vsel %vm179_vm3, %v190_v49, %v192_v54  ;;  %v201_v62 = vmul.u32 %v194_v40, %v185_v55 }
  0x59   : > { %v668_v58 = vmul.u32.u64.low %v194_v40, %v193_v57  ;;  %v669_v59 = vmul.u32.u64.high %v194_v40, %v193_v57, %v668_v58  ;;  %v671_v60 = vmul.u32.u64.low %v194_v40, %v189_v56  ;;  %v672_v61 = vmul.u32.u64.high %v194_v40, %v189_v56, %v671_v60 }
  0x5b   : > { %vm203_vm5 = vc.u32 %v669_v59, %v671_v60  ;;  %v204_v63 = vadd.s32 1, %v672_v61  ;;  %v202_v10 = vadd.s32 %v671_v60, %v669_v59 }
  0x5d   : > { %v205_v0 = vsel %vm203_vm5, %v204_v63, %v672_v61 }
  0x5e   : > { %v206_v1 = vadd.s32 %v205_v0, %v201_v62 }
  0x60   : > { %v207_v2 = vadd.s32 536870912, %v206_v1 }
  0x62   : > { %v208_v3 = vshrl.u32 %v207_v2, 30 }
  0x64   : > { %v209_v4 = vshll.u32 %v208_v3, 30  ;;  %v232_v24 = vsub.s32 4, %v208_v3 }
  0x66   : > { %v210_v5 = vsub.s32 %v206_v1, %v209_v4  ;;  %v233_v27 = vsel %vm148_vm7, %v232_v24, %v208_v3 }
  0x67   : > { %v235_v30 = vsel %vm147_vm8, 0, %v233_v27 }
  0x68   : > { %v212_v6 = vsub.s32 0, %v210_v5  ;;  %v239_v31 = vadd.s32 3, %v235_v30 }
  0x6a   : > { %v345_v7 = vmin.u32 %v212_v6, %v210_v5  ;;  %v240_v32 = vand.u32 3, %v239_v31 }
  0x6c   : > { %v214_v8 = vclz %v345_v7  ;;  %vm245_vm9 = vcmp.eq.s32.totalorder %v240_v32, 2  ;;  %vm242_vm10 = vcmp.eq.s32.totalorder %v240_v32, 0  ;;  %vm241_vm11 = vcmp.lt.s32.totalorder %v240_v32, 2 }
  0x6e   : > { %v346_v9 = vadd.s32 4294967294, %v214_v8 }
  0x70   : > { %vm347_vm6 = vcmp.lt.s32.totalorder %v346_v9, 0 }
  0x71   : > { %v217_v12 = vsel %vm347_vm6, 0, %v346_v9 }
  0x72   : > { %v218_v13 = vsub.s32 32, %v217_v12  ;;  %v219_v15 = vshll.u32 %v210_v5, %v217_v12  ;;  %v222_v16 = vsub.s32 4294967266, %v217_v12 }
  0x74   : > { %v220_v17 = vshrl.u32 %v202_v10, %v218_v13  ;;  %v223_v18 = vadd.s32 127, %v222_v16 }
  0x76   : > { %v221_v19 = vor.u32 %v220_v17, %v219_v15  ;;  %v224_v20 = vshll.u32 %v223_v18, 23 }
  0x78   : > { %v225_v21 = vor.u32 4788187, %v224_v20  ;;  %v228_v22 = vcvt.s32.f32 %v221_v19 }
  0x7a   : > { %v226_v23 = vand.u32 2147483647, %v225_v21 }
  0x7c   : > { %v229_v25 = vmul.f32 %v228_v22, %v226_v23 }
  0x7e   : > { %v230_v26 = vxor.u32 2147483648, %v229_v25 }
  0x80   : > { %v231_v28 = vsel %vm148_vm7, %v230_v26, %v229_v25 }
  0x81   : > { %v234_v29 = vsel %vm147_vm8, %v662_v11, %v231_v28 }
  0x82   : > { %428 = vcosq.f32 %v234_v29 }
  0x83   : > { %430 = vsinq.f32 %v234_v29 }
  0x8c   : > { %v429_v33 = vpop.eup %428 }
  0x8d   : > { %v431_v34 = vpop.eup %430  ;;  %v246_v35 = vxor.u32 2147483648, %v429_v33 }
  0x8e   : > { %v243_v36 = vxor.u32 2147483648, %v431_v34 }
  0x8f   : > { %v247_v14 = vsel %vm245_vm9, %v246_v35, %v431_v34 }
  0x90   : > { %v244_v37 = vsel %vm242_vm10, %v429_v33, %v243_v36 }
  0x91   : > { %v248_v38 = vsel %vm241_vm11, %v244_v37, %v247_v14 }
  0x92   : > { %v249_v39 = vsel %vm238_vm12, nan, %v248_v38 }
  0x93   : > { %250 = vst [vmem:[#allocation2] sm:$0x3] %v249_v39 }
  0x94 PF: > { %s349_s17 = sshll.u32 %s534_s9, 5  ;;  %s268_s23 = sshll.u32 %s121_s15, 4  ;;  %s269_s23 = int_to_ptr.vmem [resolvable:$true] %s268_s23 }
  0x95   : > { %s689_s22 = scalar_lea.hbm %s735_s1, %s349_s17  ;;  %s254_s24 = scalar_lea.sflag [#allocation5], %s119_s12 }
  0x96   : > { %s460_s25 = scalar_lea.vmem %s269_s23, 32  ;;  %p747_p10 = scmp.ne.s32.totalorder %s740_s16, 0 }
  0x97   : > { %p461_p8 = scmp.ne.s32.totalorder %s269_s23, %s460_s25  ;;  %s551_s26 = smov [#allocation6]  }
  0x98   : > { %s464_s27 = sshll.u32 %s551_s26, 4  ;;  %s465_s27 = int_to_ptr.vmem [resolvable:$false] %s464_s27 }
  0x99   : > { %p462_p11 = pnand %p461_p8, %p747_p10  ;;  %s466_s9 = scalar_lea.vmem %s465_s27, 64 }
  0x9a   : > { %v251_v40 = vld [vmem:[#allocation2] sm:$0x3]  ;;  %p467_p1 = scmp.lt.s32.totalorder %s269_s23, %s465_s27  ;;  %p468_p3 = scmp.lt.s32.totalorder %s466_s9, %s460_s25 }
  0x9b   : > { %252 = vst [vmem:[%s121_s15] sm:$0x3] %v251_v40  ;;  %p463_p13 = pneg %p462_p11 }
  0x9c   : > { %p469_p5 = por %p468_p3, %p467_p1 }
  0x9e   : > { %p470_p6 = pnand %p469_p5, %p463_p13 }
  0xa0   : > { %473 = shalt.err (!%p470_p6)
}
  0xa1   : > { %s474_s28 = scalar_lea.hbm %s689_s22, 32  ;;  %s478_s2 = scalar_lea.hbm %s735_s1, 64 }
  0xa2   : > { %p475_p7 = scmp.ne.s32.totalorder %s689_s22, %s474_s28  ;;  %p479_p0 = scmp.lt.u32.totalorder %s689_s22, %s735_s1 }
  0xa3   : > { %p480_p2 = scmp.lt.u32.totalorder %s478_s2, %s474_s28  ;;  %p482_p8 = scmp.lt.u32.totalorder %s474_s28, %s689_s22 }
  0xa4   : > { %p476_p9 = pnand %p475_p7, %p747_p10 }
  0xa5   : > { %p481_p4 = por %p480_p2, %p479_p0 }
  0xa6   : > { %p477_p12 = pneg %p476_p9 }
  0xa7   : > { %p483_p11 = por %p482_p8, %p481_p4 }
  0xa9   : > { %p484_p13 = pnand %p483_p11, %p477_p12 }
  0xab   : > { %487 = shalt.err (!%p484_p13)
}
  0xac   : > { %360 = dma.vmem_to_hbm [thread:$0]  (%p747_p10), %s269_s23, 32, %s689_s22, %s254_s24  }
  0xad PF: > { %p372_p1 = scmp.ge.s32.totalorder %s542_s11, 2  ;;  %s280_s5 = sand.u32 1, %s522_s6  }
  0xae   : > { %p748_p3 = scmp.ne.s32.totalorder %s741_s18, 0  ;;  %s281_s12 = scalar_lea.sflag [#allocation5], %s280_s5 }
  0xb0   : > { %p367_p5 = pnand %p372_p1, %p748_p3 }
  0xb2   : > { %517 = dma.done.wait (!%p367_p5), %s281_s12, 32  }
  0xb3   : > { %519 = vsyncadd (!%p367_p5), %s281_s12, 4294967264  ;;  %s15_s11 = sadd.s32 1, %s542_s11   ;;  %s749_s6 = smov %s526_s7 }
  0xb4   : > { %p12_p6 = scmp.ge.s32.totalorder %s15_s11, 4   ;;  %s750_s7 = smov %s530_s8 }
  0xb5   : > { %s751_s8 = smov %s615_s19  ;;  %s752_s9 = smov %s538_s10 }
  0xb6   : > { %s753_s10 = smov %s755_s14  ;;  %14 = sbr.rel (!%p12_p6) target bundleno = 5 (0x5), region = 65 }
  0xbd   :  { %286 = vsyncpa [#allocation4], 1 }
  0xbe   :  { %288 = vsyncpa [#allocation4 + $0x1], 1 }
  0xbf   :  { %289 = vsyncpa [#allocation5], 1 }
  0xc0   :  { %291 = vsyncpa [#allocation5 + $0x1], 1 }

</bundles_post_ra>
